<compile_context>
chip_gen: v5e
topology: v5e:2x2
jax: 0.10.0
libtpu: 0.0.40
codegen_flags: <defaults>
</compile_context>

<pallas_src>
import functools

import jax
import jax.numpy as jnp
from jax.experimental import pallas as pl
from jax.experimental.pallas import tpu as pltpu

HIDDEN = 128      # hidden width of every Linear in the module
FEAT_PAD = 128    # state_dim zero-padded to a full lane tile
W_ROWS = 640      # packed weights: 128 (f1) + 128 (f2) + 128 (heads K) + 256 (final K)
W_COLS = 256      # packed weights width (max N among fused matmuls)


def _round_up(n, m):
    return (n + m - 1) // m * m


def dueling_dqn_kernel(x_ref, w_ref, b_ref, out_ref, *, action_dim):
    """One row-block of the fused Dueling-DQN MLP.

    x_ref   : (RB, 128)  f32  (features zero-padded to 128)
    w_ref   : (640, 256) f32  packed weights (see pack_params for layout)
    b_ref   : (8, 256)   f32  packed biases
    out_ref : (RB, 128)  f32  col 0 = val, cols 1..A = Q-values, rest junk
    """
    x = x_ref[...]

    # static, tile-aligned views into the packed parameter slabs
    w1 = w_ref[0:128, 0:128]
    w2 = w_ref[128:256, 0:128]
    w_heads = w_ref[256:384, :]          # (128, 256) = [wvh | wah]
    w_final = w_ref[384:640, 0:128]      # (256, 128) block-diag: col0<-wv, cols1..A<-wa

    b1 = b_ref[0:1, 0:128]
    b2 = b_ref[1:2, 0:128]
    b_heads = b_ref[2:3, :]              # (1, 256) = [bvh | bah]
    b_final = b_ref[3:4, 0:128]          # (1, 128): col0 = bv, cols1..A = ba

    # f1 -> relu, f2 -> relu
    h1 = jnp.maximum(jnp.dot(x, w1, preferred_element_type=jnp.float32) + b1, 0.0)
    h2 = jnp.maximum(jnp.dot(h1, w2, preferred_element_type=jnp.float32) + b2, 0.0)

    # fused val_hidden | adv_hidden -> relu   (one K=128, N=256 matmul)
    heads = jnp.maximum(
        jnp.dot(h2, w_heads, preferred_element_type=jnp.float32) + b_heads, 0.0)

    # fused val / adv heads                   (one K=256, N=128 matmul, lane-dense)
    final = jnp.dot(heads, w_final, preferred_element_type=jnp.float32) + b_final

    # dueling combine: Q = adv + val - mean_a(adv); mean over the A valid columns only
    col = jax.lax.broadcasted_iota(jnp.int32, final.shape, 1)
    adv_mask = jnp.logical_and(col >= 1, col <= action_dim)
    adv_sum = jnp.sum(jnp.where(adv_mask, final, 0.0), axis=1, keepdims=True)
    adv_mean = adv_sum * (1.0 / action_dim)
    val = jnp.sum(jnp.where(col == 0, final, 0.0), axis=1, keepdims=True)

    out_ref[...] = final + (val - adv_mean)   # cols 1..A hold Q (lane-dense store)


def dueling_dqn_forward(x, w_packed, b_packed, action_dim, *, row_block=1024):
    """x: (B, state_dim) f32. Returns (B, action_dim) Q-values."""
    B, state_dim = x.shape
    assert state_dim <= FEAT_PAD and action_dim <= HIDDEN - 1

    rb = min(row_block, _round_up(B, 8))     # rows per grid step (sublane multiple)
    Bp = _round_up(B, rb)

    # zero-pad batch to rb multiple and features to a full 128-lane tile
    x_pad = jnp.zeros((Bp, FEAT_PAD), jnp.float32).at[:B, :state_dim].set(x)

    kernel = functools.partial(dueling_dqn_kernel, action_dim=action_dim)
    out = pl.pallas_call(
        kernel,
        out_shape=jax.ShapeDtypeStruct((Bp, FEAT_PAD), jnp.float32),
        grid=(Bp // rb,),
        in_specs=[
            pl.BlockSpec((rb, FEAT_PAD), lambda i: (i, 0)),          # activations
            pl.BlockSpec((W_ROWS, W_COLS), lambda i: (0, 0)),        # weights (resident)
            pl.BlockSpec((8, W_COLS), lambda i: (0, 0)),             # biases  (resident)
        ],
        out_specs=pl.BlockSpec((rb, FEAT_PAD), lambda i: (i, 0)),
        compiler_params=pltpu.CompilerParams(
            dimension_semantics=("parallel",)),                      # megacore on v7x
    )(x_pad, w_packed, b_packed)

    # Q lives in lane-dense columns 1..A; slice outside the kernel.
    return out[:B, 1:1 + action_dim]


def pack_params(p, state_dim, action_dim):
    """Pack the 6 Linear layers into one weight slab and one bias slab."""
    w = jnp.zeros((W_ROWS, W_COLS), jnp.float32)
    w = w.at[0:state_dim, 0:128].set(p["w1"])            # f1 (rows padded to 128)
    w = w.at[128:256, 0:128].set(p["w2"])                # f2
    w = w.at[256:384, 0:128].set(p["wvh"])               # val_hidden
    w = w.at[256:384, 128:256].set(p["wah"])             # adv_hidden
    w = w.at[384:512, 0:1].set(p["wv"])                  # val head (fed by vh half)
    w = w.at[512:640, 1:1 + action_dim].set(p["wa"])     # adv head (fed by ah half)

    b = jnp.zeros((8, W_COLS), jnp.float32)
    b = b.at[0, 0:128].set(p["b1"][0])
    b = b.at[1, 0:128].set(p["b2"][0])
    b = b.at[2, 0:128].set(p["bvh"][0])
    b = b.at[2, 128:256].set(p["bah"][0])
    b = b.at[3, 0:1].set(p["bv"][0])
    b = b.at[3, 1:1 + action_dim].set(p["ba"][0])
    return w, b


def init_params(key, state_dim, action_dim):
    """Deterministic init mimicking PyTorch nn.Linear default (U(-1/sqrt(fan_in), +))."""
    def linear(k, fan_in, fan_out):
        kw, kb = jax.random.split(k)
        bound = 1.0 / jnp.sqrt(jnp.float32(fan_in))
        wgt = jax.random.uniform(kw, (fan_in, fan_out), jnp.float32, -bound, bound)
        bias = jax.random.uniform(kb, (1, fan_out), jnp.float32, -bound, bound)
        return wgt, bias

    keys = jax.random.split(key, 6)
    w1, b1 = linear(keys[0], state_dim, HIDDEN)
    w2, b2 = linear(keys[1], HIDDEN, HIDDEN)
    wvh, bvh = linear(keys[2], HIDDEN, HIDDEN)
    wah, bah = linear(keys[3], HIDDEN, HIDDEN)
    wv, bv = linear(keys[4], HIDDEN, 1)
    wa, ba = linear(keys[5], HIDDEN, action_dim)
    return dict(w1=w1, b1=b1, w2=w2, b2=b2, wvh=wvh, bvh=bvh,
                wah=wah, bah=bah, wv=wv, bv=bv, wa=wa, ba=ba)


def reference_forward(x, p):
    """Pure-JAX reference matching the PyTorch forward semantics."""
    h1 = jax.nn.relu(x @ p["w1"] + p["b1"])
    h2 = jax.nn.relu(h1 @ p["w2"] + p["b2"])
    vh = jax.nn.relu(h2 @ p["wvh"] + p["bvh"])
    ah = jax.nn.relu(h2 @ p["wah"] + p["bah"])
    val = vh @ p["wv"] + p["bv"]
    adv = ah @ p["wa"] + p["ba"]
    return adv + val - jnp.mean(adv, axis=1, keepdims=True)


if __name__ == "__main__":
    key = jax.random.PRNGKey(0)
    k_params, k_x = jax.random.split(key)

    batch = 2
    state_dim = 8
    action_dim = 4

    params = init_params(k_params, state_dim, action_dim)
    w_packed, b_packed = pack_params(params, state_dim, action_dim)
    x = jax.random.normal(k_x, (batch, state_dim), jnp.float32)

    out = dueling_dqn_forward(x, w_packed, b_packed, action_dim)
    out = jax.block_until_ready(out)

    ref = reference_forward(x, params)
    assert out.shape == (batch, action_dim)
    assert jnp.allclose(out, ref, atol=1e-4, rtol=1e-4), (out, ref)

    print("KERNEL_OK")
</pallas_src>

<mosaic_0001>
module attributes {stable_mosaic.version = 11 : i64} {
  func.func @dueling_dqn_kernel(%arg0: i32, %arg1: memref<8x128xf32, #tpu.memory_space<vmem>>, %arg2: memref<640x256xf32, #tpu.memory_space<vmem>>, %arg3: memref<8x256xf32, #tpu.memory_space<vmem>>, %arg4: memref<8x128xf32, #tpu.memory_space<vmem>>) attributes {dimension_semantics = [#tpu.dimension_semantics<parallel>], iteration_bounds = array<i64: 1>, scalar_prefetch = 0 : i64, scratch_operands = 0 : i64, tpu.core_type = #tpu.core_type<tc>, window_params = [{transform_indices = @transform_0, window_bounds = array<i64: 8, 128>}, {pipeline_mode = #tpu.pipeline_mode<synchronous>, transform_indices = @transform_1, window_bounds = array<i64: 640, 256>}, {pipeline_mode = #tpu.pipeline_mode<synchronous>, transform_indices = @transform_2, window_bounds = array<i64: 8, 256>}, {transform_indices = @transform_3, window_bounds = array<i64: 8, 128>}]} {
    %c0 = arith.constant 0 : index
    %c0_0 = arith.constant 0 : index
    %0 = vector.load %arg1[%c0, %c0_0] : memref<8x128xf32, #tpu.memory_space<vmem>>, vector<8x128xf32>
    %c0_1 = arith.constant 0 : index
    %c0_2 = arith.constant 0 : index
    %1 = vector.load %arg2[%c0_1, %c0_2] : memref<640x256xf32, #tpu.memory_space<vmem>>, vector<128x128xf32>
    %c128 = arith.constant 128 : index
    %c0_3 = arith.constant 0 : index
    %2 = vector.load %arg2[%c128, %c0_3] : memref<640x256xf32, #tpu.memory_space<vmem>>, vector<128x128xf32>
    %c256 = arith.constant 256 : index
    %c0_4 = arith.constant 0 : index
    %3 = vector.load %arg2[%c256, %c0_4] : memref<640x256xf32, #tpu.memory_space<vmem>>, vector<128x256xf32>
    %c384 = arith.constant 384 : index
    %c0_5 = arith.constant 0 : index
    %4 = vector.load %arg2[%c384, %c0_5] : memref<640x256xf32, #tpu.memory_space<vmem>>, vector<256x128xf32>
    %c0_6 = arith.constant 0 : index
    %c0_7 = arith.constant 0 : index
    %5 = vector.load %arg3[%c0_6, %c0_7] : memref<8x256xf32, #tpu.memory_space<vmem>>, vector<1x128xf32>
    %c1 = arith.constant 1 : index
    %c0_8 = arith.constant 0 : index
    %6 = vector.load %arg3[%c1, %c0_8] : memref<8x256xf32, #tpu.memory_space<vmem>>, vector<1x128xf32>
    %c2 = arith.constant 2 : index
    %c0_9 = arith.constant 0 : index
    %7 = vector.load %arg3[%c2, %c0_9] : memref<8x256xf32, #tpu.memory_space<vmem>>, vector<1x256xf32>
    %c3 = arith.constant 3 : index
    %c0_10 = arith.constant 0 : index
    %8 = vector.load %arg3[%c3, %c0_10] : memref<8x256xf32, #tpu.memory_space<vmem>>, vector<1x128xf32>
    %cst = arith.constant dense<0.000000e+00> : vector<8x128xf32>
    %9 = tpu.matmul %0, %1, %cst {dimension_numbers = #tpu.dot_dimension_numbers<[1], [0], [0], [1], [0, 0, 1, 1], [], []>} : vector<8x128xf32>, vector<128x128xf32>, vector<8x128xf32> -> vector<8x128xf32>
    %10 = vector.broadcast %5 : vector<1x128xf32> to vector<8x128xf32>
    %11 = arith.addf %9, %10 : vector<8x128xf32>
    %cst_11 = arith.constant 0.000000e+00 : f32
    %12 = vector.broadcast %cst_11 : f32 to vector<8x128xf32>
    %13 = arith.maximumf %11, %12 : vector<8x128xf32>
    %cst_12 = arith.constant dense<0.000000e+00> : vector<8x128xf32>
    %14 = tpu.matmul %13, %2, %cst_12 {dimension_numbers = #tpu.dot_dimension_numbers<[1], [0], [0], [1], [0, 0, 1, 1], [], []>} : vector<8x128xf32>, vector<128x128xf32>, vector<8x128xf32> -> vector<8x128xf32>
    %15 = vector.broadcast %6 : vector<1x128xf32> to vector<8x128xf32>
    %16 = arith.addf %14, %15 : vector<8x128xf32>
    %cst_13 = arith.constant 0.000000e+00 : f32
    %17 = vector.broadcast %cst_13 : f32 to vector<8x128xf32>
    %18 = arith.maximumf %16, %17 : vector<8x128xf32>
    %cst_14 = arith.constant dense<0.000000e+00> : vector<8x256xf32>
    %19 = tpu.matmul %18, %3, %cst_14 {dimension_numbers = #tpu.dot_dimension_numbers<[1], [0], [0], [1], [0, 0, 1, 1], [], []>} : vector<8x128xf32>, vector<128x256xf32>, vector<8x256xf32> -> vector<8x256xf32>
    %20 = vector.broadcast %7 : vector<1x256xf32> to vector<8x256xf32>
    %21 = arith.addf %19, %20 : vector<8x256xf32>
    %cst_15 = arith.constant 0.000000e+00 : f32
    %22 = vector.broadcast %cst_15 : f32 to vector<8x256xf32>
    %23 = arith.maximumf %21, %22 : vector<8x256xf32>
    %cst_16 = arith.constant dense<0.000000e+00> : vector<8x128xf32>
    %24 = tpu.matmul %23, %4, %cst_16 {dimension_numbers = #tpu.dot_dimension_numbers<[1], [0], [0], [1], [0, 0, 1, 1], [], []>} : vector<8x256xf32>, vector<256x128xf32>, vector<8x128xf32> -> vector<8x128xf32>
    %25 = vector.broadcast %8 : vector<1x128xf32> to vector<8x128xf32>
    %26 = arith.addf %24, %25 : vector<8x128xf32>
    %27 = tpu.iota {dimensions = array<i32: 1>} : vector<8x128xi32>
    %c1_i32 = arith.constant 1 : i32
    %28 = vector.broadcast %c1_i32 : i32 to vector<8x128xi32>
    %29 = arith.cmpi sge, %27, %28 : vector<8x128xi32>
    %c4_i32 = arith.constant 4 : i32
    %30 = vector.broadcast %c4_i32 : i32 to vector<8x128xi32>
    %31 = arith.cmpi sle, %27, %30 : vector<8x128xi32>
    %32 = arith.andi %29, %31 : vector<8x128xi1>
    %cst_17 = arith.constant 0.000000e+00 : f32
    %33 = vector.broadcast %cst_17 : f32 to vector<8x128xf32>
    %34 = arith.select %32, %26, %33 : vector<8x128xi1>, vector<8x128xf32>
    %cst_18 = arith.constant dense<0.000000e+00> : vector<8xf32>
    %35 = vector.multi_reduction <add>, %34, %cst_18 [1] : vector<8x128xf32> to vector<8xf32>
    %36 = vector.shape_cast %35 : vector<8xf32> to vector<8x1xf32>
    %cst_19 = arith.constant 2.500000e-01 : f32
    %37 = vector.broadcast %cst_19 : f32 to vector<8x1xf32>
    %38 = arith.mulf %36, %37 : vector<8x1xf32>
    %c0_i32 = arith.constant 0 : i32
    %39 = vector.broadcast %c0_i32 : i32 to vector<8x128xi32>
    %40 = arith.cmpi eq, %27, %39 : vector<8x128xi32>
    %cst_20 = arith.constant 0.000000e+00 : f32
    %41 = vector.broadcast %cst_20 : f32 to vector<8x128xf32>
    %42 = arith.select %40, %26, %41 : vector<8x128xi1>, vector<8x128xf32>
    %cst_21 = arith.constant dense<0.000000e+00> : vector<8xf32>
    %43 = vector.multi_reduction <add>, %42, %cst_21 [1] : vector<8x128xf32> to vector<8xf32>
    %44 = vector.shape_cast %43 : vector<8xf32> to vector<8x1xf32>
    %45 = arith.subf %44, %38 : vector<8x1xf32>
    %46 = vector.broadcast %45 : vector<8x1xf32> to vector<8x128xf32>
    %47 = arith.addf %26, %46 : vector<8x128xf32>
    %c0_22 = arith.constant 0 : index
    %c0_23 = arith.constant 0 : index
    %48 = vector.load %arg4[%c0_22, %c0_23] : memref<8x128xf32, #tpu.memory_space<vmem>>, vector<8x128xf32>
    tpu.vector_store %arg4[%c0_22, %c0_23], %47 {strides = array<i32>} : memref<8x128xf32, #tpu.memory_space<vmem>>, vector<8x128xf32>,
    return
  }
  func.func @transform_0(%arg0: i32) -> (i32, i32) {
    %c0_i32 = arith.constant 0 : i32
    %c0_i32_0 = arith.constant 0 : i32
    return %arg0, %c0_i32 : i32, i32
  }
  func.func @transform_1(%arg0: i32) -> (i32, i32) {
    %c0_i32 = arith.constant 0 : i32
    %c0_i32_0 = arith.constant 0 : i32
    %c0_i32_1 = arith.constant 0 : i32
    return %c0_i32, %c0_i32_0 : i32, i32
  }
  func.func @transform_2(%arg0: i32) -> (i32, i32) {
    %c0_i32 = arith.constant 0 : i32
    %c0_i32_0 = arith.constant 0 : i32
    %c0_i32_1 = arith.constant 0 : i32
    return %c0_i32, %c0_i32_0 : i32, i32
  }
  func.func @transform_3(%arg0: i32) -> (i32, i32) {
    %c0_i32 = arith.constant 0 : i32
    %c0_i32_0 = arith.constant 0 : i32
    return %arg0, %c0_i32 : i32, i32
  }
}

</mosaic_0001>

<bundles_post_ra>
// kernel: tpu_custom_call.1
= control target key start
LH: loop header
LB: loop body
LE: loop exit
PB: predicated region body
PF: predicated region fallthrough
CT: control target
= control target key end

     0   :  { %8 = vsyncpa [#allocation3], 0  ;;  %s469_s0 = inlined_call_operand.hbm [shape: f32[8,128], index: 0, kind: input, shape index: {}]   ;;  %s470_s1 = inlined_call_operand.hbm [shape: f32[640,256], index: 1, kind: input, shape index: {}]   ;;  %s471_s2 = inlined_call_operand.hbm [shape: f32[8,256], index: 2, kind: input, shape index: {}]   ;;  %s472_s3 = inlined_call_operand.hbm [shape: f32[8,128], index: 3, kind: output, shape index: {}]  }
   0x1   :  { %9 = vsyncpa [#allocation6], 0  ;;  %s26_s14 = sshll.u32 %s470_s1, 4  ;;  %s27_s14 = int_to_ptr.hbm [resolvable:$true] %s26_s14 }
   0x2   :  { %10 = vsyncpa [#allocation4], 0  ;;  %s431_s15 = smov [#allocation5]   ;;  %s16_s19 = sshll.u32 %s469_s0, 4  ;;  %s17_s19 = int_to_ptr.hbm [resolvable:$true] %s16_s19 }
   0x3   :  { %s28_s16 = sshll.u32 %s431_s15, 4  ;;  %s432_s20 = smov 256   ;;  %s29_s16 = int_to_ptr.vmem [resolvable:$true] %s28_s16 }
   0x4   :  { %s433_s21 = smov 16   ;;  %s434_s22 = smov [#allocation2]  }
   0x5   :  { %34 = dma.hbm_to_vmem [thread:$0]  %s27_s14, 20480, %s29_s16, [#allocation6], %s432_s20, %s432_s20, %s433_s21  }
   0x6   :  { %s18_s23 = sshll.u32 %s434_s22, 4  ;;  %s40_s26 = sshll.u32 %s471_s2, 4  ;;  %s19_s23 = int_to_ptr.vmem [resolvable:$true] %s18_s23  ;;  %s41_s26 = int_to_ptr.hbm [resolvable:$true] %s40_s26 }
   0x7   :  { %21 = dma.hbm_to_vmem [thread:$0]  %s17_s19, 128, %s19_s23, [#allocation3]  }
   0x8   :  { %s435_s1 = smov [#allocation7]  }
   0x9   :  { %s42_s27 = sshll.u32 %s435_s1, 4  ;;  %s43_s27 = int_to_ptr.vmem [resolvable:$true] %s42_s27 }
   0xa   :  { %45 = dma.hbm_to_vmem [thread:$0]  %s41_s26, 256, %s43_s27, [#allocation6]  }
   0xb   :  { %425 = dma.done.wait [#allocation3], 128  }
   0xc   :  { %426 = vsyncadd [#allocation3], 4294967168 }
   0xd   :  { %427 = dma.done.wait [#allocation6], 20736  }
   0xe   :  { %428 = vsyncadd [#allocation6], 4294946560  ;;  %v74_v0 = vld [vmem:[#allocation5 + $0xf0] sm:$0xff]  ;;  %v73_v1 = vld [vmem:[#allocation5 + $0xe0] sm:$0xff]  ;;  %s436_s0 = smov [#allocation8]   ;;  %s312_s30 = sshll.u32 %s472_s3, 4  ;;  %s313_s30 = int_to_ptr.hbm [resolvable:$true] %s312_s30 }
   0xf   :  { %160 = vmatpush.msra.mxu0 %v74_v0  ;;  %v72_v2 = vld [vmem:[#allocation5 + $0xd0] sm:$0xff]  ;;  %v71_v3 = vld [vmem:[#allocation5 + $0xc0] sm:$0xff]  ;;  %v58_v29 = vld [vmem:[#allocation2] sm:$0xff]  ;;  %s310_s2 = sshll.u32 %s436_s0, 4  ;;  %s311_s2 = int_to_ptr.vmem [resolvable:$true] %s310_s2 }
  0x10   :  { %v90_v4 = vld [vmem:[#allocation5 + $0x1f0] sm:$0xff]  ;;  %v89_v6 = vld [vmem:[#allocation5 + $0x1e0] sm:$0xff]  ;;  %v122_v34 = vld [vmem:[#allocation5 + $0x2f8] sm:$0xff] }
  0x11   :  { %161 = vmatpush.msra.mxu0 %v73_v1  ;;  %v70_v5 = vld [vmem:[#allocation5 + $0xb0] sm:$0xff]  ;;  %181 = vmatpush.msra.mxu1 %v90_v4  ;;  %v69_v8 = vld [vmem:[#allocation5 + $0xa0] sm:$0xff]  ;;  %v120_v36 = vld [vmem:[#allocation5 + $0x2e8] sm:$0xff] }
  0x12   :  { %v88_v7 = vld [vmem:[#allocation5 + $0x1d0] sm:$0xff]  ;;  %v87_v9 = vld [vmem:[#allocation5 + $0x1c0] sm:$0xff]  ;;  %227 = vmatpush.msra.mxu3 %v122_v34  ;;  %v118_v38 = vld [vmem:[#allocation5 + $0x2d8] sm:$0xff] }
  0x13   :  { %162 = vmatpush.msra.mxu0 %v72_v2  ;;  %182 = vmatpush.msra.mxu1 %v89_v6  ;;  %v68_v10 = vld [vmem:[#allocation5 + $0x90] sm:$0xff]  ;;  %v67_v12 = vld [vmem:[#allocation5 + $0x80] sm:$0xff]  ;;  %v116_v40 = vld [vmem:[#allocation5 + $0x2c8] sm:$0xff] }
  0x14   :  { %v86_v11 = vld [vmem:[#allocation5 + $0x1b0] sm:$0xff]  ;;  %v85_v13 = vld [vmem:[#allocation5 + $0x1a0] sm:$0xff]  ;;  %228 = vmatpush.msra.mxu3 %v120_v36  ;;  %v114_v42 = vld [vmem:[#allocation5 + $0x2b8] sm:$0xff] }
  0x15   :  { %163 = vmatpush.msra.mxu0 %v71_v3  ;;  %183 = vmatpush.msra.mxu1 %v88_v7  ;;  %v66_v14 = vld [vmem:[#allocation5 + $0x70] sm:$0xff]  ;;  %v65_v16 = vld [vmem:[#allocation5 + $0x60] sm:$0xff]  ;;  %v112_v44 = vld [vmem:[#allocation5 + $0x2a8] sm:$0xff] }
  0x16   :  { %v84_v15 = vld [vmem:[#allocation5 + $0x190] sm:$0xff]  ;;  %v83_v17 = vld [vmem:[#allocation5 + $0x180] sm:$0xff]  ;;  %229 = vmatpush.msra.mxu3 %v118_v38  ;;  %v110_v46 = vld [vmem:[#allocation5 + $0x298] sm:$0xff] }
  0x17   :  { %164 = vmatpush.msra.mxu0 %v70_v5  ;;  %184 = vmatpush.msra.mxu1 %v87_v9  ;;  %v64_v18 = vld [vmem:[#allocation5 + $0x50] sm:$0xff]  ;;  %v63_v20 = vld [vmem:[#allocation5 + $0x40] sm:$0xff]  ;;  %v108_v48 = vld [vmem:[#allocation5 + $0x288] sm:$0xff] }
  0x18   :  { %v82_v19 = vld [vmem:[#allocation5 + $0x170] sm:$0xff]  ;;  %v81_v21 = vld [vmem:[#allocation5 + $0x160] sm:$0xff]  ;;  %230 = vmatpush.msra.mxu3 %v116_v40  ;;  %v106_v50 = vld [vmem:[#allocation5 + $0x278] sm:$0xff] }
  0x19   :  { %165 = vmatpush.msra.mxu0 %v69_v8  ;;  %185 = vmatpush.msra.mxu1 %v86_v11  ;;  %v62_v22 = vld [vmem:[#allocation5 + $0x30] sm:$0xff]  ;;  %v61_v24 = vld [vmem:[#allocation5 + $0x20] sm:$0xff]  ;;  %v104_v52 = vld [vmem:[#allocation5 + $0x268] sm:$0xff] }
  0x1a   :  { %v80_v23 = vld [vmem:[#allocation5 + $0x150] sm:$0xff]  ;;  %v79_v25 = vld [vmem:[#allocation5 + $0x140] sm:$0xff]  ;;  %231 = vmatpush.msra.mxu3 %v114_v42  ;;  %v102_v54 = vld [vmem:[#allocation5 + $0x258] sm:$0xff] }
  0x1b   :  { %166 = vmatpush.msra.mxu0 %v68_v10  ;;  %186 = vmatpush.msra.mxu1 %v85_v13  ;;  %v60_v26 = vld [vmem:[#allocation5 + $0x10] sm:$0xff]  ;;  %v59_v28 = vld [vmem:[#allocation5] sm:$0xff]  ;;  %v100_v56 = vld [vmem:[#allocation5 + $0x248] sm:$0xff] }
  0x1c   :  { %v78_v27 = vld [vmem:[#allocation5 + $0x130] sm:$0xff]  ;;  %v77_v30 = vld [vmem:[#allocation5 + $0x120] sm:$0xff]  ;;  %232 = vmatpush.msra.mxu3 %v112_v44  ;;  %v98_v58 = vld [vmem:[#allocation5 + $0x238] sm:$0xff] }
  0x1d   :  { %167 = vmatpush.msra.mxu0 %v67_v12  ;;  %187 = vmatpush.msra.mxu1 %v84_v15  ;;  %v76_v31 = vld [vmem:[#allocation5 + $0x110] sm:$0xff]  ;;  %v75_v32 = vld [vmem:[#allocation5 + $0x100] sm:$0xff]  ;;  %v96_v0 = vld [vmem:[#allocation5 + $0x228] sm:$0xff] }
  0x1e   :  { %v121_v33 = vld [vmem:[#allocation5 + $0x2f0] sm:$0xff]  ;;  %v119_v35 = vld [vmem:[#allocation5 + $0x2e0] sm:$0xff]  ;;  %233 = vmatpush.msra.mxu3 %v110_v46  ;;  %v94_v2 = vld [vmem:[#allocation5 + $0x218] sm:$0xff] }
  0x1f   :  { %168 = vmatpush.msra.mxu0 %v66_v14  ;;  %188 = vmatpush.msra.mxu1 %v83_v17  ;;  %v117_v37 = vld [vmem:[#allocation5 + $0x2d0] sm:$0xff]  ;;  %v115_v39 = vld [vmem:[#allocation5 + $0x2c0] sm:$0xff]  ;;  %v92_v4 = vld [vmem:[#allocation5 + $0x208] sm:$0xff] }
  0x20   :  { %207 = vmatpush.msra.mxu2 %v121_v33  ;;  %v113_v41 = vld [vmem:[#allocation5 + $0x2b0] sm:$0xff]  ;;  %v111_v43 = vld [vmem:[#allocation5 + $0x2a0] sm:$0xff]  ;;  %234 = vmatpush.msra.mxu3 %v108_v48 }
  0x21   :  { %169 = vmatpush.msra.mxu0 %v65_v16  ;;  %189 = vmatpush.msra.mxu1 %v82_v19  ;;  %v109_v45 = vld [vmem:[#allocation5 + $0x290] sm:$0xff]  ;;  %v107_v47 = vld [vmem:[#allocation5 + $0x280] sm:$0xff] }
  0x22   :  { %208 = vmatpush.msra.mxu2 %v119_v35  ;;  %v105_v49 = vld [vmem:[#allocation5 + $0x270] sm:$0xff]  ;;  %v103_v51 = vld [vmem:[#allocation5 + $0x260] sm:$0xff]  ;;  %235 = vmatpush.msra.mxu3 %v106_v50  ;;  %v289_v50 = vlaneseq }
  0x23   :  { %170 = vmatpush.msra.mxu0 %v64_v18  ;;  %190 = vmatpush.msra.mxu1 %v81_v21  ;;  %v101_v53 = vld [vmem:[#allocation5 + $0x250] sm:$0xff]  ;;  %v99_v55 = vld [vmem:[#allocation5 + $0x240] sm:$0xff] }
  0x24   :  { %209 = vmatpush.msra.mxu2 %v117_v37  ;;  %236 = vmatpush.msra.mxu3 %v104_v52  ;;  %v97_v57 = vld [vmem:[#allocation5 + $0x230] sm:$0xff]  ;;  %v155_v59 = vld [vmem:[#allocation7] ss:$0 sm:$0xff]  ;;  %v159_v52 = vld [vmem:[#allocation7 + $0x3] ss:$0 sm:$0xff] }
  0x25   :  { %171 = vmatpush.msra.mxu0 %v63_v20  ;;  %191 = vmatpush.msra.mxu1 %v80_v23  ;;  %v95_v63 = vld [vmem:[#allocation5 + $0x220] sm:$0xff]  ;;  %v93_v1 = vld [vmem:[#allocation5 + $0x210] sm:$0xff] }
  0x26   :  { %210 = vmatpush.msra.mxu2 %v115_v39  ;;  %237 = vmatpush.msra.mxu3 %v102_v54  ;;  %v91_v3 = vld [vmem:[#allocation5 + $0x200] sm:$0xff]  ;;  %v138_v5 = vld [vmem:[#allocation5 + $0x3f0] sm:$0xff] }
  0x27   :  { %172 = vmatpush.msra.mxu0 %v62_v22  ;;  %192 = vmatpush.msra.mxu1 %v79_v25  ;;  %v154_v6 = vld [vmem:[#allocation5 + $0x4f0] sm:$0xff]  ;;  %v137_v7 = vld [vmem:[#allocation5 + $0x3e0] sm:$0xff] }
  0x28   :  { %211 = vmatpush.msra.mxu2 %v113_v41  ;;  %238 = vmatpush.msra.mxu3 %v100_v56  ;;  %v153_v8 = vld [vmem:[#allocation5 + $0x4e0] sm:$0xff]  ;;  %v136_v9 = vld [vmem:[#allocation5 + $0x3d0] sm:$0xff] }
  0x29   :  { %173 = vmatpush.msra.mxu0 %v61_v24  ;;  %193 = vmatpush.msra.mxu1 %v78_v27  ;;  %v152_v10 = vld [vmem:[#allocation5 + $0x4d0] sm:$0xff]  ;;  %v135_v11 = vld [vmem:[#allocation5 + $0x3c0] sm:$0xff] }
  0x2a   :  { %212 = vmatpush.msra.mxu2 %v111_v43  ;;  %239 = vmatpush.msra.mxu3 %v98_v58  ;;  %v151_v12 = vld [vmem:[#allocation5 + $0x4c0] sm:$0xff]  ;;  %v134_v13 = vld [vmem:[#allocation5 + $0x3b0] sm:$0xff] }
  0x2b   :  { %174 = vmatpush.msra.mxu0 %v60_v26  ;;  %194 = vmatpush.msra.mxu1 %v77_v30  ;;  %v150_v14 = vld [vmem:[#allocation5 + $0x4b0] sm:$0xff]  ;;  %v133_v15 = vld [vmem:[#allocation5 + $0x3a0] sm:$0xff] }
  0x2c   :  { %213 = vmatpush.msra.mxu2 %v109_v45  ;;  %240 = vmatpush.msra.mxu3 %v96_v0  ;;  %v149_v16 = vld [vmem:[#allocation5 + $0x4a0] sm:$0xff]  ;;  %v132_v17 = vld [vmem:[#allocation5 + $0x390] sm:$0xff] }
  0x2d   :  { %175 = vmatpush.msra.mxu0 %v59_v28  ;;  %195 = vmatpush.msra.mxu1 %v76_v31  ;;  %v148_v18 = vld [vmem:[#allocation5 + $0x490] sm:$0xff]  ;;  %v131_v19 = vld [vmem:[#allocation5 + $0x380] sm:$0xff] }
  0x2e   :  { %176 = vmatmul.f32.vlgmr.msra.gmra.mxu0 %v58_v29  ;;  %214 = vmatpush.msra.mxu2 %v107_v47  ;;  %v147_v20 = vld [vmem:[#allocation5 + $0x480] sm:$0xff]  ;;  %v130_v21 = vld [vmem:[#allocation5 + $0x370] sm:$0xff] }
  0x2f   :  { %196 = vmatpush.msra.mxu1 %v75_v32  ;;  %241 = vmatpush.msra.mxu3 %v94_v2  ;;  %v146_v22 = vld [vmem:[#allocation5 + $0x470] sm:$0xff]  ;;  %v129_v23 = vld [vmem:[#allocation5 + $0x360] sm:$0xff] }
  0x30   :  { %215 = vmatpush.msra.mxu2 %v105_v49  ;;  %249 = vmatpush.msrb.mxu0 %v138_v5  ;;  %v145_v24 = vld [vmem:[#allocation5 + $0x460] sm:$0xff]  ;;  %v128_v25 = vld [vmem:[#allocation5 + $0x350] sm:$0xff] }
  0x31   :  { %242 = vmatpush.msra.mxu3 %v92_v4  ;;  %269 = vmatpush.msrb.mxu1 %v154_v6  ;;  %v144_v26 = vld [vmem:[#allocation5 + $0x450] sm:$0xff]  ;;  %v127_v27 = vld [vmem:[#allocation5 + $0x340] sm:$0xff] }
  0x32   :  { %216 = vmatpush.msra.mxu2 %v103_v51  ;;  %250 = vmatpush.msrb.mxu0 %v137_v7  ;;  %v143_v28 = vld [vmem:[#allocation5 + $0x440] sm:$0xff]  ;;  %v126_v29 = vld [vmem:[#allocation5 + $0x330] sm:$0xff]  ;;  %v290_v51 = vand.u32 127, %v289_v50 }
  0x33   :  { %270 = vmatpush.msrb.mxu1 %v153_v8  ;;  %v142_v30 = vld [vmem:[#allocation5 + $0x430] sm:$0xff]  ;;  %v156_v31 = vld [vmem:[#allocation7 + $0x1] ss:$0 sm:$0xff]  ;;  %v158_v41 = vld [vmem:[#allocation7 + $0x2] ss:$8 sm:$0x3] }
  0x34   :  { %217 = vmatpush.msra.mxu2 %v101_v53  ;;  %251 = vmatpush.msrb.mxu0 %v136_v9  ;;  %v125_v35 = vld [vmem:[#allocation5 + $0x320] sm:$0xff]  ;;  %v124_v37 = vld [vmem:[#allocation5 + $0x310] sm:$0xff]  ;;  %v203_v42 = vperm.slane %v158_v41, 0  ;;  %v204_v43 = vperm.slane %v158_v41, 1  ;;  %vm291_vm0 = vcmp.ge.s32.totalorder %v290_v51, 1  ;;  %vm292_vm1 = vcmp.le.s32.totalorder %v290_v51, 4 }
  0x35   :  { %271 = vmatpush.msrb.mxu1 %v152_v10  ;;  %v141_v36 = vld [vmem:[#allocation5 + $0x420] sm:$0xff]  ;;  %v140_v38 = vld [vmem:[#allocation5 + $0x410] sm:$0xff]  ;;  %vm293_vm2 = vmand %vm291_vm0, %vm292_vm1  ;;  %vm298_vm3 = vcmp.eq.s32.totalorder %v290_v51, 0 }
  0x36   :  { %218 = vmatpush.msra.mxu2 %v99_v55  ;;  %252 = vmatpush.msrb.mxu0 %v135_v11  ;;  %v123_v39 = vld [vmem:[#allocation5 + $0x300] sm:$0xff] }
  0x37   :  { %272 = vmatpush.msrb.mxu1 %v151_v12  ;;  %v139_v40 = vld [vmem:[#allocation5 + $0x400] sm:$0xff] }
  0x38   :  { %219 = vmatpush.msra.mxu2 %v97_v57  ;;  %253 = vmatpush.msrb.mxu0 %v134_v13 }
  0x39   :  { %273 = vmatpush.msrb.mxu1 %v150_v14 }
  0x3a   :  { %220 = vmatpush.msra.mxu2 %v95_v63  ;;  %254 = vmatpush.msrb.mxu0 %v133_v15 }
  0x3b   :  { %274 = vmatpush.msrb.mxu1 %v149_v16 }
  0x3c   :  { %221 = vmatpush.msra.mxu2 %v93_v1  ;;  %255 = vmatpush.msrb.mxu0 %v132_v17 }
  0x3d   :  { %275 = vmatpush.msrb.mxu1 %v148_v18 }
  0x3e   :  { %222 = vmatpush.msra.mxu2 %v91_v3  ;;  %256 = vmatpush.msrb.mxu0 %v131_v19 }
  0x3f   :  { %276 = vmatpush.msrb.mxu1 %v147_v20 }
  0x40   :  { %257 = vmatpush.msrb.mxu0 %v130_v21 }
  0x41   :  { %277 = vmatpush.msrb.mxu1 %v146_v22 }
  0x42   :  { %258 = vmatpush.msrb.mxu0 %v129_v23 }
  0x43   :  { %278 = vmatpush.msrb.mxu1 %v145_v24 }
  0x44   :  { %259 = vmatpush.msrb.mxu0 %v128_v25 }
  0x45   :  { %279 = vmatpush.msrb.mxu1 %v144_v26 }
  0x46   :  { %260 = vmatpush.msrb.mxu0 %v127_v27 }
  0x47   :  { %280 = vmatpush.msrb.mxu1 %v143_v28 }
  0x48   :  { %261 = vmatpush.msrb.mxu0 %v126_v29 }
  0x49   :  { %281 = vmatpush.msrb.mxu1 %v142_v30 }
  0x4a   :  { %262 = vmatpush.msrb.mxu0 %v125_v35 }
  0x4b   :  { %282 = vmatpush.msrb.mxu1 %v141_v36 }
  0x4c   :  { %263 = vmatpush.msrb.mxu0 %v124_v37 }
  0x4d   :  { %283 = vmatpush.msrb.mxu1 %v140_v38 }
  0x4e   :  { %264 = vmatpush.msrb.mxu0 %v123_v39 }
  0x4f   :  { %284 = vmatpush.msrb.mxu1 %v139_v40 }
  0xab   :  { %v177_v60 = vpop.f32.mrf.mxu0 }
  0xac   :  { %v178_v61 = vadd.f32 %v177_v60, %v155_v59 }
  0xae   :  { %v180_v62 = vmax.f32 %v178_v61, 0.0 }
  0xb0   :  { %197 = vmatmul.f32.vlgmr.msra.gmra.mxu1 %v180_v62 }
 0x12d   :  { %v198_v32 = vpop.f32.mrf.mxu1 }
 0x12e   :  { %v199_v33 = vadd.f32 %v198_v32, %v156_v31 }
 0x130   :  { %v201_v34 = vmax.f32 %v199_v33, 0.0 }
 0x132   :  { %223 = vmatmul.f32.vlgmr.msra.gmra.mxu2 %v201_v34  ;;  %243 = vmatmul.f32.vlgmr.msra.gmra.mxu3 %v201_v34 }
 0x1b5   :  { %v224_v44 = vpop.f32.mrf.mxu2  ;;  %v244_v45 = vpop.f32.mrf.mxu3 }
 0x1b6   :  { %v225_v46 = vadd.f32 %v224_v44, %v203_v42  ;;  %v245_v47 = vadd.f32 %v244_v45, %v204_v43 }
 0x1b8   :  { %v247_v48 = vmax.f32 %v225_v46, 0.0  ;;  %v248_v49 = vmax.f32 %v245_v47, 0.0 }
 0x1ba   :  { %265 = vmatmul.f32.vlgmr.msrb.gmra.mxu0 %v247_v48  ;;  %285 = vmatmul.f32.vlgmr.msrb.gmra.mxu1 %v248_v49 }
 0x237   :  { %v266_v53 = vpop.f32.mrf.mxu0  ;;  %v286_v55 = vpop.f32.mrf.mxu1 }
 0x238   :  { %v267_v54 = vadd.f32 %v266_v53, %v159_v52 }
 0x23a   :  { %v287_v56 = vadd.f32 %v286_v55, %v267_v54 }
 0x23c   :  { %v294_v57 = vsel %vm293_vm2, %v287_v56, 0.0  ;;  %v299_v58 = vsel %vm298_vm3, %v287_v56, 0.0 }
 0x23d   :  { %295 = vadd.xlane.f32.xlu0 %v294_v57 }
 0x245   :  { %300 = vadd.xlane.f32.xlu0 %v299_v58 }
 0x2b0   :  { %v296_v59 = vpop.xlane.xlu0 %295 }
 0x2b1   :  { %v297_v60 = vmul.f32 0.25, %v296_v59 }
 0x2b8   :  { %v301_v61 = vpop.xlane.xlu0 %300 }
 0x2b9   :  { %v302_v62 = vsub.f32 %v301_v61, %v297_v60 }
 0x2bb   :  { %v303_v63 = vadd.f32 %v302_v62, %v287_v56 }
 0x2bd   :  { %304 = vst [vmem:[#allocation8] sm:$0xff] %v303_v63 }
 0x2be   :  { %315 = dma.vmem_to_hbm [thread:$0]  %s311_s2, 128, %s313_s30, [#allocation4]  }
 0x2bf   :  { %429 = dma.done.wait [#allocation4], 128  }
 0x2c0   :  { %430 = vsyncadd [#allocation4], 4294967168 }
 0x2c1   :  { %320 = vsyncpa [#allocation3], 1 }
 0x2c2   :  { %321 = vsyncpa [#allocation6], 1 }
 0x2c3   :  { %322 = vsyncpa [#allocation4], 1 }

</bundles_post_ra>
